<compile_context>
chip_gen: v7x
topology: tpu7x:2x2x1
jax: 0.10.0
libtpu: 0.0.40
codegen_flags: <defaults>
</compile_context>

<pallas_src>
import functools

import jax
import jax.numpy as jnp
from jax.experimental import pallas as pl
from jax.experimental.pallas import tpu as pltpu


def _round_up(v, m):
    return (v + m - 1) // m * m


def _pick_tm(M, K, Ep, out_itemsize):
    """Largest row tile whose double-buffered footprint (+ resident weight) fits
    a ~24 MiB VMEM budget, aligned to 16 rows, with >= 2 row blocks when possible."""
    row_align = 16  # bf16 packs 16 rows per sublane group
    if M <= row_align:
        return M  # full-extent row block (exempt from the 8-row rule)
    weight_bytes = 2 * K * Ep * 2  # double-buffered bf16 resident weight
    budget = 24 * 1024 * 1024
    tm = 128
    for cand in (512, 384, 256, 128):
        per_step = 2 * cand * K * 2 + 2 * cand * Ep * out_itemsize
        if weight_bytes + per_step <= budget:
            tm = cand
            break
    # Guarantee at least 2 row blocks so v7x's second TensorCore gets work.
    tm = min(tm, _round_up(pl.cdiv(M, 2), row_align))
    return min(tm, M)


def _proj_kernel(p_ref, w_ref, b_ref, o_ref):
    # p_ref: (tm, K)  bf16 patch block
    # w_ref: (K, Ep)  bf16 projection weight (VMEM-resident, transposed)
    # b_ref: (1, Ep)  f32 bias (VMEM-resident)
    # o_ref: (tm, Ep) output block
    acc = jnp.dot(p_ref[...], w_ref[...], preferred_element_type=jnp.float32)
    o_ref[...] = (acc + b_ref[...]).astype(o_ref.dtype)


@functools.partial(
    jax.jit, static_argnames=("patch_size", "tubelet_size", "out_dtype")
)
def patch_embed_3d(x, weight, bias, *, patch_size, tubelet_size,
                   out_dtype=jnp.bfloat16):
    """x: (B, C, T, H, W); weight: (E, C, tubelet, p, p); bias: (E,).
    Returns (B, num_patches, E) with num_patches = (T//tubelet)*(H//p)*(W//p)."""
    B, C, T, H, W = x.shape
    E = weight.shape[0]
    p = patch_size
    tub = tubelet_size
    Tn, Hn, Wn = T // tub, H // p, W // p
    K = C * tub * p * p
    N = Tn * Hn * Wn
    M = B * N
    out_itemsize = jnp.dtype(out_dtype).itemsize

    # --- im2col: ONE materialized bf16 copy (cast fused into the transpose copy) ---
    xb = x.astype(jnp.bfloat16)
    xr = xb.reshape(B, C, Tn, tub, Hn, p, Wn, p)
    xr = jnp.transpose(xr, (0, 2, 4, 6, 1, 3, 5, 7))  # (B,Tn,Hn,Wn,C,tub,p,p)
    patches = xr.reshape(M, K)

    # weight: (E, C, tub, p, p) -> (K, E), bf16; bias -> (1, E) f32.
    w2d = jnp.transpose(weight.reshape(E, K), (1, 0)).astype(jnp.bfloat16)
    b2d = bias.astype(jnp.float32).reshape(1, E)

    # Pad E only when not lane-dense (typical E=768/1024 needs no padding).
    Ep = _round_up(E, 128) if E % 128 else E
    if Ep != E:
        w2d = jnp.pad(w2d, ((0, 0), (0, Ep - E)))
        b2d = jnp.pad(b2d, ((0, 0), (0, Ep - E)))

    tm = _pick_tm(M, K, Ep, out_itemsize)
    grid = (pl.cdiv(M, tm),)

    cost = pl.CostEstimate(
        flops=2 * M * K * Ep,
        transcendentals=0,
        bytes_accessed=(
            M * K * 2          # bf16 patches (read once)
            + K * Ep * 2       # bf16 weight (VMEM-resident, read once)
            + Ep * 4           # f32 bias
            + M * Ep * out_itemsize  # output
        ),
    )

    out = pl.pallas_call(
        _proj_kernel,
        out_shape=jax.ShapeDtypeStruct((M, Ep), out_dtype),
        grid_spec=pltpu.PrefetchScalarGridSpec(
            num_scalar_prefetch=0,
            grid=grid,
            in_specs=[
                pl.BlockSpec((tm, K), lambda i: (i, 0)),   # patch row tile
                pl.BlockSpec((K, Ep), lambda i: (0, 0)),   # resident weight
                pl.BlockSpec((1, Ep), lambda i: (0, 0)),   # resident bias
            ],
            out_specs=pl.BlockSpec((tm, Ep), lambda i: (i, 0)),
        ),
        compiler_params=pltpu.CompilerParams(
            dimension_semantics=("parallel",),
            vmem_limit_bytes=32 * 1024 * 1024,
        ),
        cost_estimate=cost,
    )(patches, w2d, b2d)

    if Ep != E:
        out = out[:, :E]
    # flatten(2).transpose(1, 2)  ==  (B, N, E) with patch order (t, h, w)
    return out.reshape(B, N, E)


if __name__ == "__main__":
    # Small, consistent configuration:
    #   img_size=16, patch_size=4, in_channels=4, num_frames=2, tubelet_size=1,
    #   embed_dim=32, batch=2  ->  grid_size=(2,4,4), num_patches=32
    B, C, T, H, W = 2, 4, 2, 16, 16
    patch_size, tubelet_size, embed_dim = 4, 1, 32

    key = jax.random.PRNGKey(0)
    kx, kw, kb = jax.random.split(key, 3)
    x = jax.random.normal(kx, (B, C, T, H, W), dtype=jnp.float32)
    weight = 0.02 * jax.random.normal(
        kw, (embed_dim, C, tubelet_size, patch_size, patch_size), dtype=jnp.float32
    )
    bias = 0.01 * jax.random.normal(kb, (embed_dim,), dtype=jnp.float32)

    y = patch_embed_3d(
        x, weight, bias, patch_size=patch_size, tubelet_size=tubelet_size
    )
    y = jax.block_until_ready(y)

    # Reference: plain-JAX strided conv (same semantics as nn.Conv3d), computed on
    # the same bf16-quantized operands the kernel feeds the MXU (f32 accumulation).
    xq = x.astype(jnp.bfloat16).astype(jnp.float32)
    wq = weight.astype(jnp.bfloat16).astype(jnp.float32)
    ref = jax.lax.conv_general_dilated(
        xq, wq,
        window_strides=(tubelet_size, patch_size, patch_size),
        padding="VALID",
        dimension_numbers=("NCDHW", "OIDHW", "NCDHW"),
        preferred_element_type=jnp.float32,
        precision=jax.lax.Precision.HIGHEST,
    ) + bias.reshape(1, embed_dim, 1, 1, 1)
    ref = jnp.transpose(ref.reshape(B, embed_dim, -1), (0, 2, 1))

    assert y.shape == (B, 32, embed_dim), y.shape
    err = float(jnp.max(jnp.abs(y.astype(jnp.float32) - ref)))
    assert jnp.allclose(y.astype(jnp.float32), ref, atol=2e-2, rtol=2e-2), err

    print("KERNEL_OK")
</pallas_src>

<mosaic_0001>
module attributes {stable_mosaic.version = 11 : i64} {
  func.func @_proj_kernel(%arg0: i32, %arg1: memref<32x64xbf16, #tpu.memory_space<vmem>>, %arg2: memref<64x128xbf16, #tpu.memory_space<vmem>>, %arg3: memref<1x128xf32, #tpu.memory_space<vmem>>, %arg4: memref<32x128xbf16, #tpu.memory_space<vmem>>) attributes {dimension_semantics = [#tpu.dimension_semantics<parallel>], iteration_bounds = array<i64: 2>, scalar_prefetch = 0 : i64, scratch_operands = 0 : i64, tpu.core_type = #tpu.core_type<tc>, window_params = [{transform_indices = @transform_0, window_bounds = array<i64: 32, 64>}, {pipeline_mode = #tpu.pipeline_mode<synchronous>, transform_indices = @transform_1, window_bounds = array<i64: 64, 128>}, {pipeline_mode = #tpu.pipeline_mode<synchronous>, transform_indices = @transform_2, window_bounds = array<i64: 1, 128>}, {transform_indices = @transform_3, window_bounds = array<i64: 32, 128>}]} {
    %c0 = arith.constant 0 : index
    %c0_0 = arith.constant 0 : index
    %0 = vector.load %arg1[%c0, %c0_0] : memref<32x64xbf16, #tpu.memory_space<vmem>>, vector<32x64xbf16>
    %c0_1 = arith.constant 0 : index
    %c0_2 = arith.constant 0 : index
    %1 = vector.load %arg2[%c0_1, %c0_2] : memref<64x128xbf16, #tpu.memory_space<vmem>>, vector<64x128xbf16>
    %cst = arith.constant dense<0.000000e+00> : vector<32x128xf32>
    %2 = tpu.matmul %0, %1, %cst {dimension_numbers = #tpu.dot_dimension_numbers<[1], [0], [0], [1], [0, 0, 1, 1], [], []>} : vector<32x64xbf16>, vector<64x128xbf16>, vector<32x128xf32> -> vector<32x128xf32>
    %c0_3 = arith.constant 0 : index
    %c0_4 = arith.constant 0 : index
    %3 = vector.load %arg3[%c0_3, %c0_4] : memref<1x128xf32, #tpu.memory_space<vmem>>, vector<1x128xf32>
    %4 = vector.broadcast %3 : vector<1x128xf32> to vector<32x128xf32>
    %5 = arith.addf %2, %4 : vector<32x128xf32>
    %6 = arith.truncf %5 : vector<32x128xf32> to vector<32x128xbf16>
    %c0_5 = arith.constant 0 : index
    %c0_6 = arith.constant 0 : index
    %7 = vector.load %arg4[%c0_5, %c0_6] : memref<32x128xbf16, #tpu.memory_space<vmem>>, vector<32x128xbf16>
    tpu.vector_store %arg4[%c0_5, %c0_6], %6 {strides = array<i32>} : memref<32x128xbf16, #tpu.memory_space<vmem>>, vector<32x128xbf16>,
    return
  }
  func.func @transform_0(%arg0: i32) -> (i32, i32) {
    %c0_i32 = arith.constant 0 : i32
    %c0_i32_0 = arith.constant 0 : i32
    return %arg0, %c0_i32 : i32, i32
  }
  func.func @transform_1(%arg0: i32) -> (i32, i32) {
    %c0_i32 = arith.constant 0 : i32
    %c0_i32_0 = arith.constant 0 : i32
    %c0_i32_1 = arith.constant 0 : i32
    return %c0_i32, %c0_i32_0 : i32, i32
  }
  func.func @transform_2(%arg0: i32) -> (i32, i32) {
    %c0_i32 = arith.constant 0 : i32
    %c0_i32_0 = arith.constant 0 : i32
    %c0_i32_1 = arith.constant 0 : i32
    return %c0_i32, %c0_i32_0 : i32, i32
  }
  func.func @transform_3(%arg0: i32) -> (i32, i32) {
    %c0_i32 = arith.constant 0 : i32
    %c0_i32_0 = arith.constant 0 : i32
    return %arg0, %c0_i32 : i32, i32
  }
}

</mosaic_0001>

<bundles_post_ra>
// kernel: patch_embed_3d.1
= control target key start
LH: loop header
LB: loop body
LE: loop exit
PB: predicated region body
PF: predicated region fallthrough
CT: control target
= control target key end

     0   :  { %8 = vsyncpa [#allocation3], 0  ;;  %s688_s0 = inlined_call_operand.vmem [shape: bf16[64,64], index: 0, kind: input, shape index: {}]   ;;  %s689_s1 = inlined_call_operand.vmem [shape: bf16[64,128], index: 1, kind: input, shape index: {}]   ;;  %s690_s2 = inlined_call_operand.vmem [shape: f32[1,128], index: 2, kind: input, shape index: {}]   ;;  %s691_s3 = inlined_call_operand.hbm [shape: bf16[64,128], index: 3, kind: output, shape index: {}]  }
   0x1   :  { %10 = vsyncpa [#allocation3 + $0x1], 0  ;;  %s571_s12 = smov 0   ;;  %s573_s13 = smov 0  }
   0x2   :  { %s575_s14 = smov 0   ;;  %s577_s15 = smov 0  }
   0x3 LB: > { %s592_s16 = sadd.s32 4294967295, %s546_s15   ;;  %s378_s17 = sadd.s32 4294967294, %s546_s15   ;;  %s546_s15 = sphi %s577_s15, %s697_s15   ;;  %s542_s14 = sphi %s575_s14, %s696_s14   ;;  %s538_s13 = sphi %s573_s13, %s695_s13   ;;  %s534_s12 = sphi %s571_s12, %s694_s12  }
   0x4   : > { %s596_s18 = sadd.s32 1, %s546_s15   ;;  %s91_s19 = sadd.s32 1, %s542_s14 }
   0x5   : > { %s88_s20 = ssub.s32 %s546_s15, %s596_s18  ;;  %p101_p0 = scmp.ne.s32.totalorder %s542_s14, %s538_s13 }
   0x6   : > { %p89_p1 = scmp.eq.s32.totalorder %s88_s20, 0  ;;  %p102_p2 = scmp.eq.s32.totalorder %s592_s16, 1 }
   0x7   : > { %p107_p3 = scmp.ne.s32.totalorder %s538_s13, %s534_s12  ;;  %p108_p4 = scmp.eq.s32.totalorder %s378_s17, 1 }
   0x8   : > { %s607_s21 = scalar_select %p89_p1, %s542_s14, %s91_s19  }
   0x9   : > { %p609_p5 = por %p102_p2, %p101_p0  ;;  %p613_p6 = por %p108_p4, %p107_p3 }
   0xa   : > { %p381_p7 = scmp.ge.s32.totalorder %s546_s15, 1  ;;  %p141_p8 = scmp.lt.s32.totalorder %s546_s15, 3 }
   0xc   : > { %p142_p9 = pnand %p381_p7, %p141_p8 }
   0xd   : > { %v478_v0 = vld [vmem:[%s689_s1] sm:$0xff] (!%p142_p9)   ;;  %s383_s26 = sshll.u32 (!%p142_p9), %s592_s16, 2  ;;  %v479_v1 = vld [vmem:[%s689_s1 + $0x8] sm:$0xff] (!%p142_p9)   ;;  %v480_v2 = vld [vmem:[%s689_s1 + $0x10] sm:$0xff] (!%p142_p9)   ;;  %vm226_vm0 = vcmask (!%p142_p9), 523264   ;;  %s162_s10 = sand.u32 (!%p142_p9), 1, %s538_s13  }
   0xe   : > { %145 = sbr.rel (%p142_p9) target bundleno = 264 (0x108), region = 32  ;;  %p166_p10 = scmp.lt.s32.totalorder (!%p142_p9), %s383_s26, 7  ;;  %425 = vmatprep.subr.bf16.mxu0 (!%p142_p9), %v478_v0  ;;  %v481_v4 = vld [vmem:[%s689_s1 + $0x18] sm:$0xff] (!%p142_p9)   ;;  %v385_v7 = vld [vmem:[%s690_s2] ss:$0 sm:$0xff] (!%p142_p9) }
   0xf   : > { %426 = vmatpush3.bf16.msra.mxu0 (!%p142_p9), %v478_v0  ;;  %s382_s11 = sshll.u32 (!%p142_p9), %s162_s10, 4  ;;  %s407_s25 = sshll.u32 (!%p142_p9), %s592_s16, 8 }
  0x10   : > { %427 = vmatprep.subr.bf16.mxu0 (!%p142_p9), %v479_v1  ;;  %s164_s20 = scalar_lea.vmem (!%p142_p9), [#allocation2], %s382_s11  ;;  %s645_s28 = scalar_lea.hbm (!%p142_p9), %s691_s3, %s407_s25 }
  0x11   : > { %s316_s24 = sshll.u32 (!%p142_p9), %s164_s20, 4  ;;  %s647_s16 = scalar_lea.sflag (!%p142_p9), [#allocation3], %s162_s10  ;;  %s640_s24 = int_to_ptr.vmem [resolvable:$true] %s316_s24 }
  0x12   : > { %s484_s29 = scalar_lea.vmem (!%p142_p9), %s640_s24, 256  ;;  %s548_s30 = smov (!%p142_p9), [#allocation2]  }
  0x13   : > { %428 = vmatpush3.bf16.msra.mxu0 (!%p142_p9), %v479_v1  ;;  %p485_p11 = scmp.ne.s32.totalorder (!%p142_p9), %s640_s24, %s484_s29 }
  0x14   : > { %429 = vmatprep.subr.bf16.mxu0 (!%p142_p9), %v480_v2 }
  0x15   : > { %s699_s26 = smov (!%p166_p10, %s383_s26), 7  ;;  %p486_p12 = pnand %p485_p11, %p609_p5 }
  0x16   : > { %s384_s4 = sshll.u32 %s699_s26, 2 }
  0x17   : > { %s169_s7 = scalar_lea.vmem %s688_s0, %s384_s4  ;;  %430 = vmatpush3.bf16.msra.mxu0 %v480_v2  ;;  %p487_p13 = pneg %p486_p12 }
  0x18   : > { %v482_v3 = vld [vmem:[%s169_s7] sm:$0xff]   ;;  %431 = vmatprep.subr.bf16.mxu0 %v481_v4  ;;  %v483_v5 = vld [vmem:[%s169_s7 + $0x8] sm:$0xff]   ;;  %s488_s4 = sshll.u32 %s548_s30, 4  ;;  %s489_s4 = int_to_ptr.vmem [resolvable:$false] %s488_s4 }
  0x19   : > { %433 = vmatprep.mubr.msk.bf16.mxu0 %vm226_vm0, %v482_v3  ;;  %s490_s5 = scalar_lea.vmem %s489_s4, 512  ;;  %p491_p0 = scmp.lt.s32.totalorder %s640_s24, %s489_s4 }
  0x1a   : > { %p492_p1 = scmp.lt.s32.totalorder %s490_s5, %s484_s29 }
  0x1b   : > { %432 = vmatpush3.bf16.msra.mxu0 %v481_v4 }
  0x1c   : > { %p493_p2 = por %p492_p1, %p491_p0 }
  0x1e   : > { %434 = vmatmul.mubr.msk.bf16.vlgmr.msra.gmra.mrb[0].mxu0 %vm226_vm0, %v483_v5  ;;  %p494_p3 = pnand %p493_p2, %p487_p13 }
  0xf1   : > { %v435_v6 = vpop.f32.mrb[0].mxu0 }
  0xf2   : > { %v267_v8 = vpop.f32.mrb[1].mxu0  ;;  %v276_v10 = vadd.f32 %v435_v6, %v385_v7 }
  0xf3   : > { %v436_v9 = vpop.f32.mrb[2].mxu0  ;;  %v268_v13 = vadd.f32 %v385_v7, %v267_v8 }
  0xf4   : > { %v279_v11 = vadd.f32 %v436_v9, %v385_v7  ;;  %v270_v12 = vpop.f32.mrb[3].mxu0 }
  0xf5   : > { %v271_v14 = vadd.f32 %v385_v7, %v270_v12 }
  0xf6   : > { %v416_v15 = vpack.c.bf16 %v279_v11, %v276_v10 }
  0xf7   : > { %v411_v16 = vpack.c.bf16 %v271_v14, %v268_v13 }
  0xf8   : > { %418 = vst [vmem:[%s164_s20 + $0x8] sm:$0xff] %v416_v15  }
  0xf9   : > { %412 = vst [vmem:[%s164_s20] sm:$0xff] %v411_v16  }
  0xfa   : > { %497 = shalt.err (!%p494_p3)
}
  0xfb   : > { %s498_s6 = scalar_lea.hbm %s645_s28, 256  ;;  %s502_s9 = scalar_lea.hbm %s691_s3, 512 }
  0xfc   : > { %p499_p4 = scmp.ne.s32.totalorder %s645_s28, %s498_s6  ;;  %p503_p9 = scmp.lt.u32.totalorder %s645_s28, %s691_s3 }
  0xfd   : > { %p504_p10 = scmp.lt.u32.totalorder %s502_s9, %s498_s6  ;;  %p506_p12 = scmp.lt.u32.totalorder %s498_s6, %s645_s28 }
  0xfe   : > { %p500_p7 = pnand %p499_p4, %p609_p5 }
  0xff   : > { %p505_p11 = por %p504_p10, %p503_p9 }
 0x100   : > { %p501_p8 = pneg %p500_p7 }
 0x101   : > { %p507_p13 = por %p506_p12, %p505_p11 }
 0x103   : > { %p508_p0 = pnand %p507_p13, %p501_p8 }
 0x105   : > { %511 = shalt.err (!%p508_p0)
}
 0x106   : > { %s549_s17 = smov 64   ;;  %s550_s19 = smov 4  }
 0x107   : > { %437 = dma.vmem_to_hbm [thread:$0]  (%p609_p5), %s640_s24, 256, %s645_s28, %s647_s16, %s549_s17, %s549_s17, %s550_s19  }
 0x108 PF: > { %p443_p1 = scmp.ge.s32.totalorder %s546_s15, 2  ;;  %s331_s20 = sand.u32 1, %s534_s12  }
 0x109   : > { %s332_s25 = scalar_lea.sflag [#allocation3], %s331_s20 }
 0x10a   : > { %p440_p2 = pnand %p443_p1, %p613_p6 }
 0x10c   : > { %529 = dma.done.wait (!%p440_p2), %s332_s25, 256  }
 0x10d   : > { %531 = vsyncadd (!%p440_p2), %s332_s25, 4294967040  ;;  %p13_p3 = scmp.ge.s32.totalorder %s596_s18, 4   ;;  %s694_s12 = smov %s538_s13 }
 0x10e   : > { %s695_s13 = smov %s542_s14  ;;  %s696_s14 = smov %s607_s21 }
 0x10f   : > { %s697_s15 = smov %s596_s18  ;;  %15 = sbr.rel (!%p13_p3) target bundleno = 3 (0x3), region = 67 }
 0x116   :  { %337 = vsyncpa [#allocation3], 1 }
 0x117   :  { %339 = vsyncpa [#allocation3 + $0x1], 1 }

</bundles_post_ra>
